<compile_context>
chip_gen: v5e
topology: v5e:2x2
jax: 0.10.0
libtpu: 0.0.40
codegen_flags: <defaults>
</compile_context>

<pallas_src>
import jax
import jax.numpy as jnp
from jax.experimental import pallas as pl
from jax.experimental.pallas import tpu as pltpu


_LANES = 128          # lane-dense slab width (vreg lane count)
_MAX_DMA_CHUNKS = 4   # a few in-flight DMAs overlap issue/completion latency


def _resolve_shape(in_shape, target_shape):
    """Resolve a single -1 in target_shape, torch.reshape-style (with checks)."""
    target_shape = list(target_shape)
    total = 1
    for d in in_shape:
        total *= d
    if target_shape.count(-1) > 1:
        raise ValueError("only one dimension may be -1")
    if -1 in target_shape:
        idx = target_shape.index(-1)
        known = 1
        for j, d in enumerate(target_shape):
            if j != idx:
                known *= d
        if known == 0 or total % known != 0:
            raise ValueError(f"cannot reshape {in_shape} into {tuple(target_shape)}")
        target_shape[idx] = total // known
    out_total = 1
    for d in target_shape:
        out_total *= d
    if out_total != total:
        raise ValueError(f"cannot reshape {in_shape} into {tuple(target_shape)}")
    return tuple(target_shape)


def _chunk_bounds(dim0, max_chunks, align):
    """Static, align-rounded chunk boundaries along dim 0 (Python ints)."""
    if max_chunks <= 1 or dim0 < 2 * align:
        return [0, dim0]
    n = min(max_chunks, dim0 // align)
    step = -(-dim0 // n)                   # ceil div
    step = -(-step // align) * align       # round chunk size up to `align`
    bounds = list(range(0, dim0, step))
    bounds.append(dim0)
    return sorted(set(b for b in bounds if b <= dim0))


def _make_dma_copy_kernel(bounds):
    """Kernel copying x_hbm -> o_hbm via a few large async HBM->HBM DMAs."""
    n_chunks = len(bounds) - 1

    def kernel(x_hbm, o_hbm, sem):
        copies = []
        for c in range(n_chunks):          # static unroll: start all DMAs
            lo, hi = bounds[c], bounds[c + 1]
            cp = pltpu.make_async_copy(
                x_hbm.at[lo:hi], o_hbm.at[lo:hi], sem.at[c])
            cp.start()
            copies.append(cp)
        for cp in copies:                   # then wait for completion
            cp.wait()

    return kernel, n_chunks


def _dma_copy(x):
    """Materialized copy of `x` via direct HBM->HBM async DMAs (no VMEM staging)."""
    if x.ndim == 2 and x.shape[1] == _LANES:
        # Lane-dense (rows, 128) slab: chunk along rows on sublane-tile
        # boundaries (8 for 32-bit, 16 for bf16, 32 for int8/fp8 packing).
        itemsize = jnp.dtype(x.dtype).itemsize
        align = 8 * max(1, 4 // max(1, itemsize))
        bounds = _chunk_bounds(x.shape[0], _MAX_DMA_CHUNKS, align)
    else:
        # Non-128-divisible / odd-rank case: one whole-array DMA is robust
        # (no VMEM footprint regardless of size) and bandwidth-bound anyway.
        bounds = [0, x.shape[0]]

    kernel, n_chunks = _make_dma_copy_kernel(bounds)
    return pl.pallas_call(
        kernel,
        out_shape=jax.ShapeDtypeStruct(x.shape, x.dtype),
        in_specs=[pl.BlockSpec(memory_space=pl.ANY)],
        out_specs=pl.BlockSpec(memory_space=pl.ANY),
        scratch_shapes=[pltpu.SemaphoreType.DMA((n_chunks,))],
    )(x)


def pallas_reshape(x, shape, *, force_copy=True):
    """Pallas equivalent of `_Reshape(shape)(x)` == x.reshape(shape)."""
    out_shape = _resolve_shape(x.shape, shape)
    total = x.size

    if not force_copy or total == 0:
        # Contiguous row-major reshape is metadata-only: zero bytes of work.
        return jnp.reshape(x, out_shape)

    # Wrapper-side layout plumbing (metadata-only): present a lane-dense
    # (rows, 128) slab to the DMA kernel when the element count allows.
    if total % _LANES == 0:
        x_dma = jnp.reshape(x, (total // _LANES, _LANES))
    elif x.ndim == 0:
        x_dma = jnp.reshape(x, (1,))
    else:
        x_dma = x

    y = _dma_copy(x_dma)
    return jnp.reshape(y, out_shape)


if __name__ == "__main__":
    key = jax.random.PRNGKey(0)
    k1, k2 = jax.random.split(key)

    # Small NCHW-like input consistent with a typical conv-feature tensor.
    x = jax.random.normal(k1, (2, 4, 16, 16), dtype=jnp.float32)
    target_shape = (2, 4, 256)  # the `shape` argument of _Reshape

    y = pallas_reshape(x, target_shape)
    y = jax.block_until_ready(y)

    ref = jnp.reshape(x, target_shape)
    assert y.shape == ref.shape, (y.shape, ref.shape)
    assert y.dtype == ref.dtype, (y.dtype, ref.dtype)
    assert bool(jnp.array_equal(y, ref)), "Pallas reshape mismatch (lane-dense path)"

    # Exercise the non-128-divisible path (fixed fallback) and -1 inference.
    x2 = jax.random.normal(k2, (3, 5, 7), dtype=jnp.float32)
    y2 = jax.block_until_ready(pallas_reshape(x2, (5, -1)))
    ref2 = jnp.reshape(x2, (5, 21))
    assert y2.shape == ref2.shape, (y2.shape, ref2.shape)
    assert bool(jnp.array_equal(y2, ref2)), "Pallas reshape mismatch (fallback path)"

    print("KERNEL_OK")
</pallas_src>

<mosaic_0001>
module attributes {stable_mosaic.version = 11 : i64} {
  func.func @kernel(%arg0: memref<16x128xf32, #tpu.memory_space<any>>, %arg1: memref<16x128xf32, #tpu.memory_space<any>>, %arg2: memref<2x!tpu.dma_semaphore, #tpu.memory_space<semaphore_mem>>) attributes {dimension_semantics = [], scalar_prefetch = 0 : i64, scratch_operands = 1 : i64, tpu.core_type = #tpu.core_type<tc>} {
    %c0_i32 = arith.constant 0 : i32
    %c0_i32_0 = arith.constant 0 : i32
    %c0_i32_1 = arith.constant 0 : i32
    %0 = tpu.memref_slice %arg0[%c0_i32_0, %c0_i32_1] : memref<16x128xf32, #tpu.memory_space<any>> -> memref<8x128xf32, #tpu.memory_space<any>>
    %c0_i32_2 = arith.constant 0 : i32
    %c0_i32_3 = arith.constant 0 : i32
    %1 = tpu.memref_slice %arg1[%c0_i32_2, %c0_i32_3] : memref<16x128xf32, #tpu.memory_space<any>> -> memref<8x128xf32, #tpu.memory_space<any>>
    %2 = tpu.memref_slice %arg2[%c0_i32] : memref<2x!tpu.dma_semaphore, #tpu.memory_space<semaphore_mem>> -> memref<1x!tpu.dma_semaphore, #tpu.memory_space<semaphore_mem>>
    %3 = tpu.memref_squeeze %2 : memref<1x!tpu.dma_semaphore, #tpu.memory_space<semaphore_mem>> -> memref<!tpu.dma_semaphore, #tpu.memory_space<semaphore_mem>>
    tpu.enqueue_dma source(%0 : memref<8x128xf32, #tpu.memory_space<any>>) target(%1 : memref<8x128xf32, #tpu.memory_space<any>>) target_semaphore(%3 : memref<!tpu.dma_semaphore, #tpu.memory_space<semaphore_mem>>)
    %c1_i32 = arith.constant 1 : i32
    %c8_i32 = arith.constant 8 : i32
    %c0_i32_4 = arith.constant 0 : i32
    %4 = tpu.memref_slice %arg0[%c8_i32, %c0_i32_4] : memref<16x128xf32, #tpu.memory_space<any>> -> memref<8x128xf32, #tpu.memory_space<any>>
    %c8_i32_5 = arith.constant 8 : i32
    %c0_i32_6 = arith.constant 0 : i32
    %5 = tpu.memref_slice %arg1[%c8_i32_5, %c0_i32_6] : memref<16x128xf32, #tpu.memory_space<any>> -> memref<8x128xf32, #tpu.memory_space<any>>
    %6 = tpu.memref_slice %arg2[%c1_i32] : memref<2x!tpu.dma_semaphore, #tpu.memory_space<semaphore_mem>> -> memref<1x!tpu.dma_semaphore, #tpu.memory_space<semaphore_mem>>
    %7 = tpu.memref_squeeze %6 : memref<1x!tpu.dma_semaphore, #tpu.memory_space<semaphore_mem>> -> memref<!tpu.dma_semaphore, #tpu.memory_space<semaphore_mem>>
    tpu.enqueue_dma source(%4 : memref<8x128xf32, #tpu.memory_space<any>>) target(%5 : memref<8x128xf32, #tpu.memory_space<any>>) target_semaphore(%7 : memref<!tpu.dma_semaphore, #tpu.memory_space<semaphore_mem>>)
    %c0_i32_7 = arith.constant 0 : i32
    %c0_i32_8 = arith.constant 0 : i32
    %c0_i32_9 = arith.constant 0 : i32
    %8 = tpu.memref_slice %arg0[%c0_i32_8, %c0_i32_9] : memref<16x128xf32, #tpu.memory_space<any>> -> memref<8x128xf32, #tpu.memory_space<any>>
    %c0_i32_10 = arith.constant 0 : i32
    %c0_i32_11 = arith.constant 0 : i32
    %9 = tpu.memref_slice %arg1[%c0_i32_10, %c0_i32_11] : memref<16x128xf32, #tpu.memory_space<any>> -> memref<8x128xf32, #tpu.memory_space<any>>
    %10 = tpu.memref_slice %arg2[%c0_i32_7] : memref<2x!tpu.dma_semaphore, #tpu.memory_space<semaphore_mem>> -> memref<1x!tpu.dma_semaphore, #tpu.memory_space<semaphore_mem>>
    %11 = tpu.memref_squeeze %10 : memref<1x!tpu.dma_semaphore, #tpu.memory_space<semaphore_mem>> -> memref<!tpu.dma_semaphore, #tpu.memory_space<semaphore_mem>>
    tpu.wait_dma2 semaphore(%11 : memref<!tpu.dma_semaphore, #tpu.memory_space<semaphore_mem>>) src(%8 : memref<8x128xf32, #tpu.memory_space<any>>) dst(%9 : memref<8x128xf32, #tpu.memory_space<any>>)
    %c1_i32_12 = arith.constant 1 : i32
    %c8_i32_13 = arith.constant 8 : i32
    %c0_i32_14 = arith.constant 0 : i32
    %12 = tpu.memref_slice %arg0[%c8_i32_13, %c0_i32_14] : memref<16x128xf32, #tpu.memory_space<any>> -> memref<8x128xf32, #tpu.memory_space<any>>
    %c8_i32_15 = arith.constant 8 : i32
    %c0_i32_16 = arith.constant 0 : i32
    %13 = tpu.memref_slice %arg1[%c8_i32_15, %c0_i32_16] : memref<16x128xf32, #tpu.memory_space<any>> -> memref<8x128xf32, #tpu.memory_space<any>>
    %14 = tpu.memref_slice %arg2[%c1_i32_12] : memref<2x!tpu.dma_semaphore, #tpu.memory_space<semaphore_mem>> -> memref<1x!tpu.dma_semaphore, #tpu.memory_space<semaphore_mem>>
    %15 = tpu.memref_squeeze %14 : memref<1x!tpu.dma_semaphore, #tpu.memory_space<semaphore_mem>> -> memref<!tpu.dma_semaphore, #tpu.memory_space<semaphore_mem>>
    tpu.wait_dma2 semaphore(%15 : memref<!tpu.dma_semaphore, #tpu.memory_space<semaphore_mem>>) src(%12 : memref<8x128xf32, #tpu.memory_space<any>>) dst(%13 : memref<8x128xf32, #tpu.memory_space<any>>)
    return
  }
}

</mosaic_0001>

<bundles_post_ra>
// kernel: tpu_custom_call.1
= control target key start
LH: loop header
LB: loop body
LE: loop exit
PB: predicated region body
PF: predicated region fallthrough
CT: control target
= control target key end

     0   :  { %s60_s15 = smov [#allocation2]   ;;  %s61_s16 = smov [#allocation3]   ;;  %s87_s0 = inlined_call_operand.hbm [shape: f32[16,128], index: 0, kind: input, shape index: {}]   ;;  %s88_s1 = inlined_call_operand.hbm [shape: f32[16,128], index: 1, kind: output, shape index: {}]  }
   0x1   :  { %s10_s8 = sshll.u32 %s87_s0, 4  ;;  %s12_s11 = sshll.u32 %s88_s1, 4  ;;  %s11_s8 = int_to_ptr.hbm [resolvable:$true] %s10_s8  ;;  %s13_s11 = int_to_ptr.hbm [resolvable:$true] %s12_s11 }
   0x2   :  { %s17_s14 = scalar_lea.hbm %s87_s0, 8  ;;  %s62_s17 = smov 0  }
   0x3   :  { %16 = dma.general %s11_s8, 128, %s13_s11, %s60_s15, %s61_s16, [#allocation4], %s62_s17, 0  }
   0x4   :  { %s18_s20 = scalar_lea.hbm %s88_s1, 8  ;;  %s24_s21 = sshll.u32 %s17_s14, 4  ;;  %s25_s21 = int_to_ptr.hbm [resolvable:$true] %s24_s21 }
   0x5   :  { %s26_s22 = sshll.u32 %s18_s20, 4  ;;  %s63_s23 = smov [#allocation2 + $0x1]   ;;  %s27_s22 = int_to_ptr.hbm [resolvable:$true] %s26_s22 }
   0x6   :  { %s64_s24 = smov [#allocation5]  }
   0x7   :  { %30 = dma.general %s25_s21, 128, %s27_s22, %s63_s23, %s64_s24, [#allocation6], %s62_s17, 0  }
   0x8   :  { %56 = dma.done.wait [#allocation2], 128 }
   0x9   :  { %57 = vsyncadd [#allocation2], 4294967168 }
   0xa   :  { %58 = dma.done.wait [#allocation2 + $0x1], 128 }
   0xb   :  { %59 = vsyncadd [#allocation2 + $0x1], 4294967168 }
   0xc   :  { %36 = vsyncmov [#allocation2] }
   0xf   :  { %s37_s0 = vpop.sfrf %36 }
  0x10   :  { %p49_p0 = scmp.ne.s32.totalorder %s37_s0, 0 }
  0x12   :  { %41 = shalt.err (%p49_p0)  }
  0x13   :  { %43 = vsyncmov [#allocation2 + $0x1] }
  0x16   :  { %s44_s25 = vpop.sfrf %43 }
  0x17   :  { %p50_p1 = scmp.ne.s32.totalorder %s44_s25, 0 }
  0x19   :  { %48 = shalt.err (%p50_p1)  }

</bundles_post_ra>
